<compile_context>
chip_gen: v7x
topology: tpu7x:2x2x1
jax: 0.10.0
libtpu: 0.0.40
codegen_flags: <defaults>
</compile_context>

<pallas_src>
import functools
import math

import jax
import jax.numpy as jnp
from jax.experimental import pallas as pl
from jax.experimental.pallas import tpu as pltpu


# ----------------------------------------------------------------------------
# In-kernel math helpers (operate on loaded f32 arrays, not refs)
# ----------------------------------------------------------------------------

def _erf_f32(x):
    # Eigen / XLA float32 erf rational approximation (matches XLA's f32 erf).
    x = jnp.clip(x, -4.0, 4.0)
    x2 = x * x
    alpha = (-2.72614225801306e-10, 2.77068142495902e-08, -2.10102402082508e-06,
             -5.69250639462346e-05, -7.34990630326855e-04, -2.95459980854025e-03,
             -1.60960333262415e-02)
    beta = (-1.45660718464996e-05, -2.13374055278905e-04, -1.68282697438203e-03,
            -7.37332916720468e-03, -1.42647390514189e-02)
    p = jnp.full_like(x2, alpha[0])
    for a in alpha[1:]:
        p = p * x2 + a
    p = p * x
    q = jnp.full_like(x2, beta[0])
    for bcoef in beta[1:]:
        q = q * x2 + bcoef
    return p / q


def _gelu_exact(x):
    # exact (erf-based) GELU, same as torch nn.GELU() default
    return 0.5 * x * (1.0 + _erf_f32(x * (1.0 / math.sqrt(2.0))))


def _ln(x, g, b, eps=1e-5):
    # torch-style LayerNorm over last dim (biased variance); g/b are (1, C).
    mean = jnp.mean(x, axis=-1, keepdims=True)
    xc = x - mean
    var = jnp.mean(xc * xc, axis=-1, keepdims=True)
    return xc * jax.lax.rsqrt(var + eps) * g + b


def _attention(xq, xkv, wq, wk, wv, wo, bo, num_heads, scale):
    """Multi-head attention on one batch element. xq: (N, C), xkv: (M, C)."""
    f32 = jnp.float32
    n_rows, c = xq.shape
    dh = c // num_heads
    # qkv_bias=False in the reference -> no bias adds here.
    q = jnp.dot(xq, wq, preferred_element_type=f32)
    k = jnp.dot(xkv, wk, preferred_element_type=f32)
    v = jnp.dot(xkv, wv, preferred_element_type=f32)
    out = jnp.zeros((n_rows, c), f32) + bo          # output-proj bias
    for h in range(num_heads):                      # static unroll, lane slices
        lo, hi = h * dh, (h + 1) * dh
        s = jax.lax.dot_general(q[:, lo:hi], k[:, lo:hi],
                                (((1,), (1,)), ((), ())),
                                preferred_element_type=f32) * scale   # (N, M)
        s = s - jnp.max(s, axis=-1, keepdims=True)
        p = jnp.exp(s)
        p = p * pl.reciprocal(jnp.sum(p, axis=-1, keepdims=True), approx=True)
        ctx_h = jnp.dot(p, v[:, lo:hi], preferred_element_type=f32)   # (N, dh)
        # ctx @ wo decomposed per head -> no lane concatenate needed.
        out = out + jnp.dot(ctx_h, wo[lo:hi, :], preferred_element_type=f32)
    return out


# ----------------------------------------------------------------------------
# Pallas kernels
# ----------------------------------------------------------------------------

def _proj_kernel(vis_ref, mu_ref,
                 mem_w_ref, mem_b_ref, mem_g_ref, mem_beta_ref,
                 txt_w_ref, txt_b_ref,
                 mem_out_ref, text_out_ref):
    """memory_proj (Linear + LayerNorm) and text_proj (Linear), one batch."""
    f32 = jnp.float32
    vis = vis_ref[0].astype(f32)                                   # (M, C)
    m = jnp.dot(vis, mem_w_ref[...], preferred_element_type=f32) + mem_b_ref[...]
    m = _ln(m, mem_g_ref[...], mem_beta_ref[...])
    mem_out_ref[0] = m.astype(mem_out_ref.dtype)

    mu = mu_ref[0].astype(f32)                                     # (N, C)
    t = jnp.dot(mu, txt_w_ref[...], preferred_element_type=f32) + txt_b_ref[...]
    text_out_ref[0] = t.astype(text_out_ref.dtype)


def _decoder_layer_kernel(x_ref, mem_ref,
                          ln1_g_ref, ln1_b_ref, ln2_g_ref, ln2_b_ref,
                          sa_wq_ref, sa_wk_ref, sa_wv_ref, sa_wo_ref, sa_bo_ref,
                          ca_wq_ref, ca_wk_ref, ca_wv_ref, ca_wo_ref, ca_bo_ref,
                          w1_ref, b1_ref, w2_ref, b2_ref,
                          o_ref, *, num_heads, scale):
    """One full TransformerDecoderLayer for one batch element, fully fused."""
    f32 = jnp.float32
    x = x_ref[0].astype(f32)                                       # (N, C)
    mem = mem_ref[0].astype(f32)                                   # (M, C)
    n_rows = x.shape[0]

    # q = k = v = norm1(x); qc = x + self_attn(q, k, v)
    qkv = _ln(x, ln1_g_ref[...], ln1_b_ref[...])
    qc = x + _attention(qkv, qkv,
                        sa_wq_ref[...], sa_wk_ref[...], sa_wv_ref[...],
                        sa_wo_ref[...], sa_bo_ref[...], num_heads, scale)
    # qc = norm2(qc); vc = cross_attn(qc, mem, mem)
    qc = _ln(qc, ln2_g_ref[...], ln2_b_ref[...])
    vc = _attention(qc, mem,
                    ca_wq_ref[...], ca_wk_ref[...], ca_wv_ref[...],
                    ca_wo_ref[...], ca_bo_ref[...], num_heads, scale)

    # out = mlp(vc) + mlp(qc): single MLP pass over stacked rows (weights
    # loaded/used once, one set of matmuls on 2N rows).
    both = jnp.concatenate([vc, qc], axis=0)                       # (2N, C)
    h = jnp.dot(both, w1_ref[...], preferred_element_type=f32) + b1_ref[...]
    h = _gelu_exact(h)
    m = jnp.dot(h, w2_ref[...], preferred_element_type=f32) + b2_ref[...]
    o_ref[0] = (m[:n_rows, :] + m[n_rows:, :]).astype(o_ref.dtype)


def _reparam_kernel(mu_ref, var_ref, eps_ref, z_ref):
    """z[e] = eps[e] * exp(0.5*logvar) + mu for all E draws, one batch."""
    f32 = jnp.float32
    mu = mu_ref[0].astype(f32)                                     # (N, C)
    std = jnp.exp(0.5 * var_ref[0].astype(f32))                    # computed once
    num_eps = eps_ref.shape[1]
    for e in range(num_eps):                                       # static unroll
        z_ref[0, e] = (eps_ref[0, e].astype(f32) * std + mu).astype(z_ref.dtype)


# ----------------------------------------------------------------------------
# Wrappers (one pallas_call each)
# ----------------------------------------------------------------------------

def fused_projections(visual, mu, params):
    B, M, C = visual.shape
    N = mu.shape[1]
    wspec = pl.BlockSpec((C, C), lambda b: (0, 0))
    bspec = pl.BlockSpec((1, C), lambda b: (0, 0))
    mem, text = pl.pallas_call(
        _proj_kernel,
        out_shape=(jax.ShapeDtypeStruct((B, M, C), visual.dtype),
                   jax.ShapeDtypeStruct((B, N, C), mu.dtype)),
        grid=(B,),
        in_specs=[
            pl.BlockSpec((1, M, C), lambda b: (b, 0, 0)),
            pl.BlockSpec((1, N, C), lambda b: (b, 0, 0)),
            wspec, bspec, bspec, bspec,
            wspec, bspec,
        ],
        out_specs=(pl.BlockSpec((1, M, C), lambda b: (b, 0, 0)),
                   pl.BlockSpec((1, N, C), lambda b: (b, 0, 0))),
        compiler_params=pltpu.CompilerParams(dimension_semantics=("parallel",)),
    )(visual, mu,
      params["mem_w"], params["mem_b"].reshape(1, C),
      params["mem_ln_g"].reshape(1, C), params["mem_ln_b"].reshape(1, C),
      params["txt_w"], params["txt_b"].reshape(1, C))
    return mem, text


def decoder_layer(text, mem, lp, num_heads):
    B, N, C = text.shape
    M = mem.shape[1]
    scale = (C // num_heads) ** (-0.5)
    wspec = pl.BlockSpec((C, C), lambda b: (0, 0))
    bspec = pl.BlockSpec((1, C), lambda b: (0, 0))
    return pl.pallas_call(
        functools.partial(_decoder_layer_kernel, num_heads=num_heads, scale=scale),
        out_shape=jax.ShapeDtypeStruct((B, N, C), text.dtype),
        grid=(B,),
        in_specs=[
            pl.BlockSpec((1, N, C), lambda b: (b, 0, 0)),
            pl.BlockSpec((1, M, C), lambda b: (b, 0, 0)),
            bspec, bspec, bspec, bspec,                 # ln1_g/b, ln2_g/b
            wspec, wspec, wspec, wspec, bspec,          # self-attn wq,wk,wv,wo,bo
            wspec, wspec, wspec, wspec, bspec,          # cross-attn
            pl.BlockSpec((C, 4 * C), lambda b: (0, 0)), # mlp w1
            pl.BlockSpec((1, 4 * C), lambda b: (0, 0)), # mlp b1
            pl.BlockSpec((4 * C, C), lambda b: (0, 0)), # mlp w2
            bspec,                                      # mlp b2
        ],
        out_specs=pl.BlockSpec((1, N, C), lambda b: (b, 0, 0)),
        compiler_params=pltpu.CompilerParams(dimension_semantics=("parallel",)),
    )(text, mem,
      lp["ln1_g"].reshape(1, C), lp["ln1_b"].reshape(1, C),
      lp["ln2_g"].reshape(1, C), lp["ln2_b"].reshape(1, C),
      lp["self_attn"]["wq"], lp["self_attn"]["wk"], lp["self_attn"]["wv"],
      lp["self_attn"]["wo"], lp["self_attn"]["bo"].reshape(1, C),
      lp["cross_attn"]["wq"], lp["cross_attn"]["wk"], lp["cross_attn"]["wv"],
      lp["cross_attn"]["wo"], lp["cross_attn"]["bo"].reshape(1, C),
      lp["mlp_w1"], lp["mlp_b1"].reshape(1, 4 * C),
      lp["mlp_w2"], lp["mlp_b2"].reshape(1, C))


def reparameterize_batch(mu, var, eps):
    # eps: (B, E, N, C); mu/var: (B, N, C). Single launch for all E draws.
    B, E, N, C = eps.shape
    return pl.pallas_call(
        _reparam_kernel,
        out_shape=jax.ShapeDtypeStruct((B, E, N, C), mu.dtype),
        grid=(B,),
        in_specs=[
            pl.BlockSpec((1, N, C), lambda b: (b, 0, 0)),
            pl.BlockSpec((1, N, C), lambda b: (b, 0, 0)),
            pl.BlockSpec((1, E, N, C), lambda b: (b, 0, 0, 0)),
        ],
        out_specs=pl.BlockSpec((1, E, N, C), lambda b: (b, 0, 0, 0)),
        compiler_params=pltpu.CompilerParams(dimension_semantics=("parallel",)),
    )(mu, var, eps)


def context_decoder_forward(params, mu, visual, eps, num_heads):
    mem, text = fused_projections(visual, mu, params)          # 1 launch
    var = None
    for lp in params["layers"]:
        # Faithful to the reference: `text` is NOT updated between layers,
        # so only the last layer's output becomes `var`.
        var = decoder_layer(text, mem, lp, num_heads)           # 1 launch / layer
    z_lst = reparameterize_batch(mu, var, eps)                  # 1 launch, all draws
    return z_lst, mu, var


# ----------------------------------------------------------------------------
# Deterministic parameter init (synthetic; mirrors _init_weights)
# ----------------------------------------------------------------------------

def _trunc_normal(key, shape, std=0.01):
    return std * jax.random.truncated_normal(key, -2.0, 2.0, shape, jnp.float32)


def init_attention_params(key, dim):
    ks = jax.random.split(key, 4)
    return {
        "wq": _trunc_normal(ks[0], (dim, dim)),
        "wk": _trunc_normal(ks[1], (dim, dim)),
        "wv": _trunc_normal(ks[2], (dim, dim)),
        "wo": _trunc_normal(ks[3], (dim, dim)),
        "bo": jnp.zeros((dim,), jnp.float32),
    }


def init_layer_params(key, dim):
    ks = jax.random.split(key, 4)
    return {
        "self_attn": init_attention_params(ks[0], dim),
        "cross_attn": init_attention_params(ks[1], dim),
        "ln1_g": jnp.ones((dim,), jnp.float32), "ln1_b": jnp.zeros((dim,), jnp.float32),
        "ln2_g": jnp.ones((dim,), jnp.float32), "ln2_b": jnp.zeros((dim,), jnp.float32),
        "mlp_w1": _trunc_normal(ks[2], (dim, 4 * dim)),
        "mlp_b1": jnp.zeros((4 * dim,), jnp.float32),
        "mlp_w2": _trunc_normal(ks[3], (4 * dim, dim)),
        "mlp_b2": jnp.zeros((dim,), jnp.float32),
    }


def init_context_decoder_params(key, dim, num_layers):
    ks = jax.random.split(key, 2 + num_layers)
    return {
        "mem_w": _trunc_normal(ks[0], (dim, dim)),
        "mem_b": jnp.zeros((dim,), jnp.float32),
        "mem_ln_g": jnp.ones((dim,), jnp.float32),
        "mem_ln_b": jnp.zeros((dim,), jnp.float32),
        "txt_w": _trunc_normal(ks[1], (dim, dim)),
        "txt_b": jnp.zeros((dim,), jnp.float32),
        "layers": [init_layer_params(k, dim) for k in ks[2:]],
    }


# ----------------------------------------------------------------------------

if __name__ == "__main__":
    # Small shapes consistent with the module (transformer_width=32, heads=4, 2 layers)
    B, N, M = 2, 8, 16
    width, heads, num_layers = 32, 4, 2
    E = 2  # number of reparameterize draws in the reference forward

    key = jax.random.PRNGKey(0)
    kp, kmu, kvis, keps = jax.random.split(key, 4)

    params = init_context_decoder_params(kp, width, num_layers)
    mu = jax.random.normal(kmu, (B, N, width), jnp.float32)
    visual = jax.random.normal(kvis, (B, M, width), jnp.float32)
    # TODO(synk): torch.randn_like draws from torch's RNG; deterministic JAX normals used.
    eps = jax.random.normal(keps, (B, E, N, width), jnp.float32)

    z_lst, mu_out, var = context_decoder_forward(params, mu, visual, eps, heads)
    jax.block_until_ready((z_lst, mu_out, var))

    assert z_lst.shape == (B, E, N, width)
    assert mu_out.shape == (B, N, width)
    assert var.shape == (B, N, width)
    assert bool(jnp.all(jnp.isfinite(z_lst))) and bool(jnp.all(jnp.isfinite(var)))
    print("KERNEL_OK")
</pallas_src>

<mosaic_0001>
module attributes {stable_mosaic.version = 11 : i64} {
  func.func @_proj_kernel(%arg0: i32, %arg1: memref<1x16x32xf32, #tpu.memory_space<vmem>>, %arg2: memref<1x8x32xf32, #tpu.memory_space<vmem>>, %arg3: memref<32x32xf32, #tpu.memory_space<vmem>>, %arg4: memref<1x32xf32, #tpu.memory_space<vmem>>, %arg5: memref<1x32xf32, #tpu.memory_space<vmem>>, %arg6: memref<1x32xf32, #tpu.memory_space<vmem>>, %arg7: memref<32x32xf32, #tpu.memory_space<vmem>>, %arg8: memref<1x32xf32, #tpu.memory_space<vmem>>, %arg9: memref<1x16x32xf32, #tpu.memory_space<vmem>>, %arg10: memref<1x8x32xf32, #tpu.memory_space<vmem>>) attributes {dimension_semantics = [#tpu.dimension_semantics<parallel>], iteration_bounds = array<i64: 2>, scalar_prefetch = 0 : i64, scratch_operands = 0 : i64, tpu.core_type = #tpu.core_type<tc>, window_params = [{transform_indices = @transform_0, window_bounds = array<i64: 1, 16, 32>}, {transform_indices = @transform_1, window_bounds = array<i64: 1, 8, 32>}, {pipeline_mode = #tpu.pipeline_mode<synchronous>, transform_indices = @transform_2, window_bounds = array<i64: 32, 32>}, {pipeline_mode = #tpu.pipeline_mode<synchronous>, transform_indices = @transform_3, window_bounds = array<i64: 1, 32>}, {pipeline_mode = #tpu.pipeline_mode<synchronous>, transform_indices = @transform_4, window_bounds = array<i64: 1, 32>}, {pipeline_mode = #tpu.pipeline_mode<synchronous>, transform_indices = @transform_5, window_bounds = array<i64: 1, 32>}, {pipeline_mode = #tpu.pipeline_mode<synchronous>, transform_indices = @transform_6, window_bounds = array<i64: 32, 32>}, {pipeline_mode = #tpu.pipeline_mode<synchronous>, transform_indices = @transform_7, window_bounds = array<i64: 1, 32>}, {transform_indices = @transform_8, window_bounds = array<i64: 1, 16, 32>}, {transform_indices = @transform_9, window_bounds = array<i64: 1, 8, 32>}]} {
    %c0 = arith.constant 0 : index
    %c0_0 = arith.constant 0 : index
    %c0_1 = arith.constant 0 : index
    %0 = vector.load %arg1[%c0, %c0_0, %c0_1] : memref<1x16x32xf32, #tpu.memory_space<vmem>>, vector<1x16x32xf32>
    %1 = vector.shape_cast %0 : vector<1x16x32xf32> to vector<16x32xf32>
    %c0_2 = arith.constant 0 : index
    %c0_3 = arith.constant 0 : index
    %2 = vector.load %arg3[%c0_2, %c0_3] : memref<32x32xf32, #tpu.memory_space<vmem>>, vector<32x32xf32>
    %cst = arith.constant dense<0.000000e+00> : vector<16x32xf32>
    %3 = tpu.matmul %1, %2, %cst {dimension_numbers = #tpu.dot_dimension_numbers<[1], [0], [0], [1], [0, 0, 1, 1], [], []>} : vector<16x32xf32>, vector<32x32xf32>, vector<16x32xf32> -> vector<16x32xf32>
    %c0_4 = arith.constant 0 : index
    %c0_5 = arith.constant 0 : index
    %4 = vector.load %arg4[%c0_4, %c0_5] : memref<1x32xf32, #tpu.memory_space<vmem>>, vector<1x32xf32>
    %5 = vector.broadcast %4 : vector<1x32xf32> to vector<16x32xf32>
    %6 = arith.addf %3, %5 : vector<16x32xf32>
    %c0_6 = arith.constant 0 : index
    %c0_7 = arith.constant 0 : index
    %7 = vector.load %arg5[%c0_6, %c0_7] : memref<1x32xf32, #tpu.memory_space<vmem>>, vector<1x32xf32>
    %c0_8 = arith.constant 0 : index
    %c0_9 = arith.constant 0 : index
    %8 = vector.load %arg6[%c0_8, %c0_9] : memref<1x32xf32, #tpu.memory_space<vmem>>, vector<1x32xf32>
    %cst_10 = arith.constant dense<0.000000e+00> : vector<16xf32>
    %9 = vector.multi_reduction <add>, %6, %cst_10 [1] : vector<16x32xf32> to vector<16xf32>
    %10 = vector.shape_cast %9 : vector<16xf32> to vector<16x1xf32>
    %cst_11 = arith.constant 3.200000e+01 : f32
    %11 = vector.broadcast %cst_11 : f32 to vector<16x1xf32>
    %12 = arith.divf %10, %11 : vector<16x1xf32>
    %13 = vector.broadcast %12 : vector<16x1xf32> to vector<16x32xf32>
    %14 = arith.subf %6, %13 : vector<16x32xf32>
    %15 = arith.mulf %14, %14 : vector<16x32xf32>
    %cst_12 = arith.constant dense<0.000000e+00> : vector<16xf32>
    %16 = vector.multi_reduction <add>, %15, %cst_12 [1] : vector<16x32xf32> to vector<16xf32>
    %17 = vector.shape_cast %16 : vector<16xf32> to vector<16x1xf32>
    %cst_13 = arith.constant 3.200000e+01 : f32
    %18 = vector.broadcast %cst_13 : f32 to vector<16x1xf32>
    %19 = arith.divf %17, %18 : vector<16x1xf32>
    %cst_14 = arith.constant 9.99999974E-6 : f32
    %20 = vector.broadcast %cst_14 : f32 to vector<16x1xf32>
    %21 = arith.addf %19, %20 : vector<16x1xf32>
    %22 = math.rsqrt %21 : vector<16x1xf32>
    %23 = vector.broadcast %22 : vector<16x1xf32> to vector<16x32xf32>
    %24 = arith.mulf %14, %23 : vector<16x32xf32>
    %25 = vector.broadcast %7 : vector<1x32xf32> to vector<16x32xf32>
    %26 = arith.mulf %24, %25 : vector<16x32xf32>
    %27 = vector.broadcast %8 : vector<1x32xf32> to vector<16x32xf32>
    %28 = arith.addf %26, %27 : vector<16x32xf32>
    %c0_15 = arith.constant 0 : index
    %c0_16 = arith.constant 0 : index
    %c0_17 = arith.constant 0 : index
    %29 = vector.load %arg9[%c0_15, %c0_16, %c0_17] : memref<1x16x32xf32, #tpu.memory_space<vmem>>, vector<1x16x32xf32>
    %30 = vector.shape_cast %29 : vector<1x16x32xf32> to vector<16x32xf32>
    %31 = vector.shape_cast %28 : vector<16x32xf32> to vector<1x16x32xf32>
    tpu.vector_store %arg9[%c0_15, %c0_16, %c0_17], %31 {strides = array<i32>} : memref<1x16x32xf32, #tpu.memory_space<vmem>>, vector<1x16x32xf32>,
    %c0_18 = arith.constant 0 : index
    %c0_19 = arith.constant 0 : index
    %c0_20 = arith.constant 0 : index
    %32 = vector.load %arg2[%c0_18, %c0_19, %c0_20] : memref<1x8x32xf32, #tpu.memory_space<vmem>>, vector<1x8x32xf32>
    %33 = vector.shape_cast %32 : vector<1x8x32xf32> to vector<8x32xf32>
    %c0_21 = arith.constant 0 : index
    %c0_22 = arith.constant 0 : index
    %34 = vector.load %arg7[%c0_21, %c0_22] : memref<32x32xf32, #tpu.memory_space<vmem>>, vector<32x32xf32>
    %cst_23 = arith.constant dense<0.000000e+00> : vector<8x32xf32>
    %35 = tpu.matmul %33, %34, %cst_23 {dimension_numbers = #tpu.dot_dimension_numbers<[1], [0], [0], [1], [0, 0, 1, 1], [], []>} : vector<8x32xf32>, vector<32x32xf32>, vector<8x32xf32> -> vector<8x32xf32>
    %c0_24 = arith.constant 0 : index
    %c0_25 = arith.constant 0 : index
    %36 = vector.load %arg8[%c0_24, %c0_25] : memref<1x32xf32, #tpu.memory_space<vmem>>, vector<1x32xf32>
    %37 = vector.broadcast %36 : vector<1x32xf32> to vector<8x32xf32>
    %38 = arith.addf %35, %37 : vector<8x32xf32>
    %c0_26 = arith.constant 0 : index
    %c0_27 = arith.constant 0 : index
    %c0_28 = arith.constant 0 : index
    %39 = vector.load %arg10[%c0_26, %c0_27, %c0_28] : memref<1x8x32xf32, #tpu.memory_space<vmem>>, vector<1x8x32xf32>
    %40 = vector.shape_cast %39 : vector<1x8x32xf32> to vector<8x32xf32>
    %41 = vector.shape_cast %38 : vector<8x32xf32> to vector<1x8x32xf32>
    tpu.vector_store %arg10[%c0_26, %c0_27, %c0_28], %41 {strides = array<i32>} : memref<1x8x32xf32, #tpu.memory_space<vmem>>, vector<1x8x32xf32>,
    return
  }
  func.func @transform_0(%arg0: i32) -> (i32, i32, i32) {
    %c0_i32 = arith.constant 0 : i32
    %c0_i32_0 = arith.constant 0 : i32
    %c0_i32_1 = arith.constant 0 : i32
    return %arg0, %c0_i32, %c0_i32_0 : i32, i32, i32
  }
  func.func @transform_1(%arg0: i32) -> (i32, i32, i32) {
    %c0_i32 = arith.constant 0 : i32
    %c0_i32_0 = arith.constant 0 : i32
    %c0_i32_1 = arith.constant 0 : i32
    return %arg0, %c0_i32, %c0_i32_0 : i32, i32, i32
  }
  func.func @transform_2(%arg0: i32) -> (i32, i32) {
    %c0_i32 = arith.constant 0 : i32
    %c0_i32_0 = arith.constant 0 : i32
    %c0_i32_1 = arith.constant 0 : i32
    return %c0_i32, %c0_i32_0 : i32, i32
  }
  func.func @transform_3(%arg0: i32) -> (i32, i32) {
    %c0_i32 = arith.constant 0 : i32
    %c0_i32_0 = arith.constant 0 : i32
    %c0_i32_1 = arith.constant 0 : i32
    return %c0_i32, %c0_i32_0 : i32, i32
  }
  func.func @transform_4(%arg0: i32) -> (i32, i32) {
    %c0_i32 = arith.constant 0 : i32
    %c0_i32_0 = arith.constant 0 : i32
    %c0_i32_1 = arith.constant 0 : i32
    return %c0_i32, %c0_i32_0 : i32, i32
  }
  func.func @transform_5(%arg0: i32) -> (i32, i32) {
    %c0_i32 = arith.constant 0 : i32
    %c0_i32_0 = arith.constant 0 : i32
    %c0_i32_1 = arith.constant 0 : i32
    return %c0_i32, %c0_i32_0 : i32, i32
  }
  func.func @transform_6(%arg0: i32) -> (i32, i32) {
    %c0_i32 = arith.constant 0 : i32
    %c0_i32_0 = arith.constant 0 : i32
    %c0_i32_1 = arith.constant 0 : i32
    return %c0_i32, %c0_i32_0 : i32, i32
  }
  func.func @transform_7(%arg0: i32) -> (i32, i32) {
    %c0_i32 = arith.constant 0 : i32
    %c0_i32_0 = arith.constant 0 : i32
    %c0_i32_1 = arith.constant 0 : i32
    return %c0_i32, %c0_i32_0 : i32, i32
  }
  func.func @transform_8(%arg0: i32) -> (i32, i32, i32) {
    %c0_i32 = arith.constant 0 : i32
    %c0_i32_0 = arith.constant 0 : i32
    %c0_i32_1 = arith.constant 0 : i32
    return %arg0, %c0_i32, %c0_i32_0 : i32, i32, i32
  }
  func.func @transform_9(%arg0: i32) -> (i32, i32, i32) {
    %c0_i32 = arith.constant 0 : i32
    %c0_i32_0 = arith.constant 0 : i32
    %c0_i32_1 = arith.constant 0 : i32
    return %arg0, %c0_i32, %c0_i32_0 : i32, i32, i32
  }
}

</mosaic_0001>

<bundles_post_ra>
// kernel: tpu_custom_call.1
= control target key start
LH: loop header
LB: loop body
LE: loop exit
PB: predicated region body
PF: predicated region fallthrough
CT: control target
= control target key end

     0   :  { %s1638_s0 = inlined_call_operand.hbm [shape: f32[2,16,32], index: 0, kind: input, shape index: {}]   ;;  %s1639_s1 = inlined_call_operand.hbm [shape: f32[2,8,32], index: 1, kind: input, shape index: {}]   ;;  %s1640_s2 = inlined_call_operand.hbm [shape: f32[32,32], index: 2, kind: input, shape index: {}]   ;;  %s1641_s3 = inlined_call_operand.vmem [shape: f32[1,32], index: 3, kind: input, shape index: {}]   ;;  %s1642_s4 = inlined_call_operand.vmem [shape: f32[1,32], index: 4, kind: input, shape index: {}]   ;;  %s1643_s5 = inlined_call_operand.vmem [shape: f32[1,32], index: 5, kind: input, shape index: {}]   ;;  %s1644_s6 = inlined_call_operand.hbm [shape: f32[32,32], index: 6, kind: input, shape index: {}]   ;;  %s1645_s7 = inlined_call_operand.vmem [shape: f32[1,32], index: 7, kind: input, shape index: {}]   ;;  %s1646_s8 = inlined_call_operand.hbm [shape: f32[2,16,32], index: 8, kind: output, shape index: {0}]   ;;  %s1647_s9 = inlined_call_operand.hbm [shape: f32[2,8,32], index: 9, kind: output, shape index: {1}]  }
   0x1   :  { %1658 = sst [smem:[#allocation23_spill]] %s1638_s0 }
   0x2   :  { %1659 = sst [smem:[#allocation24_spill]] %s1640_s2 }
   0x3   :  { %1660 = sst [smem:[#allocation25_spill]] %s1644_s6 }
   0x4   :  { %15 = vsyncpa [#allocation3], 0 }
   0x5   :  { %17 = vsyncpa [#allocation3 + $0x1], 0 }
   0x6   :  { %18 = vsyncpa [#allocation6], 0 }
   0x7   :  { %20 = vsyncpa [#allocation6 + $0x1], 0 }
   0x8   :  { %21 = vsyncpa [#allocation9], 0 }
   0x9   :  { %22 = vsyncpa [#allocation4], 0 }
   0xa   :  { %24 = vsyncpa [#allocation4 + $0x1], 0 }
   0xb   :  { %25 = vsyncpa [#allocation12], 0 }
   0xc   :  { %27 = vsyncpa [#allocation12 + $0x1], 0  ;;  %s1294_s30 = smov 0   ;;  %s1296_s10 = smov 0  }
   0xd   :  { %s1298_s11 = smov 0   ;;  %s1300_s12 = smov 0  }
   0xe LB: > { %1661 = sst [smem:[#allocation19_spill]] %s1225_s11  ;;  %s1315_s13 = sadd.s32 4294967295, %s1229_s12   ;;  %s1229_s12 = sphi %s1300_s12, %s1688_s12   ;;  %s1225_s11 = sphi %s1298_s11, %s1693_s11   ;;  %s1221_s10 = sphi %s1296_s10, %s1692_s10   ;;  %s1217_s30 = sphi %s1294_s30, %s1691_s30  }
   0xf   : > { %s835_s14 = sadd.s32 4294967294, %s1229_s12   ;;  %p53_p0 = scmp.ne.s32.totalorder %s1221_s10, %s1217_s30 }
  0x10   : > { %p1648_p1 = scmp.eq.s32.totalorder %s1315_s13, 0  ;;  %p235_p3 = scmp.eq.s32.totalorder %s835_s14, 1 }
  0x11   : > { %p836_p5 = scmp.ge.s32.totalorder %s1229_s12, 1  ;;  %p268_p7 = scmp.lt.s32.totalorder %s1229_s12, 3 }
  0x12   : > { %p1324_p4 = por %p1648_p1, %p53_p0  ;;  %p1329_p6 = por %p235_p3, %p53_p0 }
  0x13   : > { %p1334_p8 = pnand %p836_p5, %p268_p7  ;;  %s1231_s18 = smov [#allocation7]  }
  0x14   : > { %s1662_s15 = scalar_select %p1324_p4, 1, 0 }
  0x15   : > { %s1663_s16 = scalar_select %p1329_p6, 1, 0 }
  0x16   : > { %s1665_s17 = scalar_select %p1334_p8, 1, 0 }
  0x17   : > { %1664 = sst [smem:[#allocation20_spill]] %s1663_s16  ;;  %s280_s19 = sshll.u32 %s1231_s18, 4  ;;  %s1338_s19 = int_to_ptr.vmem [resolvable:$true] %s280_s19 }
  0x18   : > { %p931_p9 = pneg %p1334_p8  ;;  %s1232_s21 = smov [#allocation8]  }
  0x19   : > { %s302_s22 = sshll.u32 %s1232_s21, 4  ;;  %s1667_s2 = sld [smem:[#allocation24_spill]]  ;;  %s1349_s22 = int_to_ptr.vmem [resolvable:$true] %s302_s22 }
  0x1a   : > { %p1345_p11 = pnand %p931_p9, %p1648_p1 }
  0x1c   : > { %p1005_p13 = pneg %p1345_p11 }
  0x1f   : > { %s1003_s25 = scalar_lea.hbm %s1667_s2, 512 }
  0x20   : > { %p1004_p12 = scmp.ne.s32.totalorder %s1667_s2, %s1003_s25  ;;  %p1010_p5 = scmp.lt.u32.totalorder %s1003_s25, %s1667_s2 }
  0x22   : > { %p1006_p0 = pnand %p1005_p13, %p1004_p12 }
  0x24   : > { %p1007_p3 = pneg %p1006_p0 }
  0x26   : > { %p1012_p7 = pnand %p1010_p5, %p1007_p3 }
  0x28   : > { %1015 = shalt.err (!%p1012_p7)
}
  0x29   : > { %s1016_s14 = scalar_lea.vmem %s1338_s19, 512  ;;  %p1024_p2 = scmp.lt.s32.totalorder %s1338_s19, %s1338_s19 }
  0x2a   : > { %p1017_p9 = scmp.ne.s32.totalorder %s1338_s19, %s1016_s14  ;;  %p1025_p12 = scmp.lt.s32.totalorder %s1016_s14, %s1016_s14 }
  0x2c   : > { %p1019_p10 = pnand %p1017_p9, %p1005_p13  ;;  %p1026_p0 = por %p1025_p12, %p1024_p2 }
  0x2e   : > { %p1020_p1 = pneg %p1019_p10 }
  0x30   : > { %p1027_p6 = pnand %p1026_p0, %p1020_p1 }
  0x32   : > { %1030 = shalt.err (!%p1027_p6)
}
  0x33   : > { %s1650_s18 = smov 128   ;;  %s1651_s21 = smov 8  }
  0x34   : > { %934 = dma.hbm_to_vmem [thread:$0]  (!%p1345_p11), %s1667_s2, 512, %s1338_s19, [#allocation6], %s1650_s18, %s1650_s18, %s1651_s21  }
  0x35   : > { %s1668_s6 = sld [smem:[#allocation25_spill]] }
  0x3b   : > { %s1031_s27 = scalar_lea.hbm %s1668_s6, 512 }
  0x3c   : > { %p1032_p1 = scmp.ne.s32.totalorder %s1668_s6, %s1031_s27  ;;  %p1038_p10 = scmp.lt.u32.totalorder %s1031_s27, %s1668_s6 }
  0x3e   : > { %p1034_p2 = pnand %p1032_p1, %p1005_p13 }
  0x40   : > { %p1035_p6 = pneg %p1034_p2 }
  0x42   : > { %p1040_p3 = pnand %p1038_p10, %p1035_p6 }
  0x44   : > { %1043 = shalt.err (!%p1040_p3)
}
  0x45   : > { %s1044_s19 = scalar_lea.vmem %s1349_s22, 512  ;;  %p1052_p12 = scmp.lt.s32.totalorder %s1349_s22, %s1349_s22 }
  0x46   : > { %p1045_p5 = scmp.ne.s32.totalorder %s1349_s22, %s1044_s19  ;;  %p1053_p0 = scmp.lt.s32.totalorder %s1044_s19, %s1044_s19 }
  0x48   : > { %p1047_p7 = pnand %p1045_p5, %p1005_p13  ;;  %p1054_p1 = por %p1053_p0, %p1052_p12 }
  0x4a   : > { %p1048_p9 = pneg %p1047_p7 }
  0x4c   : > { %p1055_p2 = pnand %p1054_p1, %p1048_p9 }
  0x4e   : > { %1058 = shalt.err (!%p1055_p2)
}
  0x4f   : > { %937 = dma.hbm_to_vmem [thread:$0]  (!%p1345_p11), %s1668_s6, 512, %s1349_s22, [#allocation9], %s1650_s18, %s1650_s18, %s1651_s21  }
  0x50   : > { %s1410_s20 = sadd.s32 1, %s1229_s12   ;;  %s40_s24 = sadd.s32 1, %s1225_s11 }
  0x51   : > { %1669 = sst [smem:[#allocation21_spill]] %s1410_s20  ;;  %s37_s25 = ssub.s32 %s1229_s12, %s1410_s20 }
  0x52   : > { %p47_p13 = scmp.ne.s32.totalorder %s1225_s11, %s1221_s10  ;;  %p38_p6 = scmp.eq.s32.totalorder %s37_s25, 0 }
  0x53   : > { %p48_p10 = scmp.eq.s32.totalorder %s1229_s12, 0  ;;  %p1670_p3 = scmp.eq.s32.totalorder %s1315_s13, 1 }
  0x54   : > { %p954_p7 = scmp.lt.s32.totalorder %s1229_s12, 2  ;;  %s1429_s28 = sand.u32 1, %s1225_s11  }
  0x55   : > { %p1420_p5 = por %p1670_p3, %p47_p13  ;;  %p49_p9 = por %p48_p10, %p47_p13 }
  0x56   : > { %s1426_s27 = scalar_select %p38_p6, %s1225_s11, %s40_s24  }
  0x57   : > { %s1671_s26 = scalar_select %p1420_p5, 1, 0 }
  0x58   : > { %1672 = sst [smem:[#allocation22_spill]] %s1426_s27  ;;  %s840_s22 = sshll.u32 %s1429_s28, 4 }
  0x59   : > { %s866_s29 = sshll.u32 %s1229_s12, 8  ;;  %s1673_s0 = sld [smem:[#allocation23_spill]] }
  0x5a   : > { %s323_s23 = scalar_lea.vmem [#allocation2], %s840_s22  ;;  %p1440_p11 = pnand %p954_p7, %p49_p9 }
  0x5b   : > { %s330_s24 = sshll.u32 %s323_s23, 4  ;;  %s843_s21 = sshll.u32 %s1429_s28, 3  ;;  %s1438_s24 = int_to_ptr.vmem [resolvable:$true] %s330_s24 }
  0x5c   : > { %s320_s2 = scalar_lea.sflag [#allocation3], %s1429_s28  ;;  %p1061_p0 = pneg %p1440_p11 }
  0x5f   : > { %s1436_s16 = scalar_lea.hbm %s1673_s0, %s866_s29  ;;  %s1064_s19 = scalar_lea.hbm %s1673_s0, 512 }
  0x60   : > { %s1059_s14 = scalar_lea.hbm %s1436_s16, 256  ;;  %p1065_p13 = scmp.lt.u32.totalorder %s1436_s16, %s1673_s0 }
  0x61   : > { %p1060_p12 = scmp.ne.s32.totalorder %s1436_s16, %s1059_s14  ;;  %p1066_p6 = scmp.lt.u32.totalorder %s1064_s19, %s1059_s14 }
  0x62   : > { %p1068_p3 = scmp.lt.u32.totalorder %s1059_s14, %s1436_s16 }
  0x63   : > { %p1062_p1 = pnand %p1061_p0, %p1060_p12  ;;  %p1067_p10 = por %p1066_p6, %p1065_p13 }
  0x65   : > { %p1063_p2 = pneg %p1062_p1  ;;  %p1069_p7 = por %p1068_p3, %p1067_p10 }
  0x67   : > { %p1070_p9 = pnand %p1069_p7, %p1063_p2 }
  0x69   : > { %1073 = shalt.err (!%p1070_p9)
}
  0x6a   : > { %s1074_s18 = scalar_lea.vmem %s1438_s24, 256  ;;  %s1235_s22 = smov [#allocation2]  }
  0x6b   : > { %p1075_p12 = scmp.ne.s32.totalorder %s1438_s24, %s1074_s18  ;;  %s1079_s29 = sshll.u32 %s1235_s22, 4  ;;  %s1080_s29 = int_to_ptr.vmem [resolvable:$false] %s1079_s29 }
  0x6c   : > { %s1081_s6 = scalar_lea.vmem %s1080_s29, 512  ;;  %p1082_p4 = scmp.lt.s32.totalorder %s1438_s24, %s1080_s29 }
  0x6d   : > { %p1077_p1 = pnand %p1075_p12, %p1061_p0  ;;  %p1083_p13 = scmp.lt.s32.totalorder %s1081_s6, %s1074_s18 }
  0x6f   : > { %p1078_p5 = pneg %p1077_p1  ;;  %p1084_p6 = por %p1083_p13, %p1082_p4 }
  0x71   : > { %p1085_p10 = pnand %p1084_p6, %p1078_p5 }
  0x73   : > { %1088 = shalt.err (!%p1085_p10)
}
  0x74   : > { %s1675_s14 = smov 8   ;;  %s1676_s19 = smov 128  }
  0x75   : > { %941 = dma.hbm_to_vmem [thread:$0]  (!%p1440_p11), %s1436_s16, 256, %s1438_s24, %s320_s2, %s1676_s19, %s1676_s19, %s1675_s14  }
  0x76   : > { %s844_s23 = sshll.u32 %s1229_s12, 7  ;;  %s344_s6 = scalar_lea.vmem [#allocation5], %s843_s21 }
  0x77   : > { %s1481_s29 = scalar_lea.hbm %s1639_s1, %s844_s23  ;;  %s351_s0 = sshll.u32 %s344_s6, 4  ;;  %s352_s0 = int_to_ptr.vmem [resolvable:$true] %s351_s0 }
  0x78   : > { %s1677_s27 = sand.u32 1, %s1229_s12   ;;  %s1089_s20 = scalar_lea.hbm %s1481_s29, 128 }
  0x79   : > { %s341_s11 = scalar_lea.sflag [#allocation6], %s1677_s27  ;;  %p1090_p4 = scmp.ne.s32.totalorder %s1481_s29, %s1089_s20 }
  0x7a   : > { %s1094_s24 = scalar_lea.hbm %s1639_s1, 256  ;;  %p1095_p3 = scmp.lt.u32.totalorder %s1481_s29, %s1639_s1 }
  0x7b   : > { %p1092_p5 = pnand %p1090_p4, %p1061_p0  ;;  %p1096_p7 = scmp.lt.u32.totalorder %s1094_s24, %s1089_s20 }
  0x7c   : > { %p1098_p12 = scmp.lt.u32.totalorder %s1089_s20, %s1481_s29 }
  0x7d   : > { %p1093_p2 = pneg %p1092_p5  ;;  %p1097_p9 = por %p1096_p7, %p1095_p3 }
  0x7f   : > { %p1099_p1 = por %p1098_p12, %p1097_p9 }
  0x81   : > { %p1100_p13 = pnand %p1099_p1, %p1093_p2 }
  0x83   : > { %1103 = shalt.err (!%p1100_p13)
}
  0x84   : > { %s1104_s21 = scalar_lea.vmem %s352_s0, 128  ;;  %s1236_s27 = smov [#allocation5]  }
  0x85   : > { %p1105_p6 = scmp.ne.s32.totalorder %s352_s0, %s1104_s21  ;;  %s1109_s19 = sshll.u32 %s1236_s27, 4  ;;  %s1110_s19 = int_to_ptr.vmem [resolvable:$false] %s1109_s19 }
  0x86   : > { %s1111_s23 = scalar_lea.vmem %s1110_s19, 256  ;;  %p1112_p5 = scmp.lt.s32.totalorder %s352_s0, %s1110_s19 }
  0x87   : > { %p1107_p10 = pnand %p1105_p6, %p1061_p0  ;;  %p1113_p8 = scmp.lt.s32.totalorder %s1111_s23, %s1104_s21 }
  0x89   : > { %p1108_p4 = pneg %p1107_p10  ;;  %p1114_p3 = por %p1113_p8, %p1112_p5 }
  0x8b   : > { %p1115_p7 = pnand %p1114_p3, %p1108_p4 }
  0x8d   : > { %1118 = shalt.err (!%p1115_p7)
}
  0x8e   : > { %944 = dma.hbm_to_vmem [thread:$0]  (!%p1440_p11), %s1481_s29, 128, %s352_s0, %s341_s11  }
  0x8f   : > { %p1678_p2 = scmp.ne.s32.totalorder %s1665_s17, 0 }
  0x90   : > { %s1509_s20 = sand.u32 (!%p1678_p2), 1, %s1221_s10   ;;  %p1679_p8 = scmp.ne.s32.totalorder (!%p1678_p2), %s1662_s15, 0 }
  0x91   : > { %360 = sbr.rel (%p1678_p2) target bundleno = 721 (0x2d1), region = 52  ;;  %s846_s22 = sshll.u32 (!%p1678_p2), %s1509_s20, 4 }
  0x92   : > { %s363_s18 = scalar_lea.sflag (!%p1678_p2), [#allocation3], %s1509_s20  ;;  %s366_s6 = scalar_lea.vmem (!%p1678_p2), [#allocation2], %s846_s22 }
  0x98   : > { %1192 = dma.done.wait (%p1679_p8), %s363_s18, 256  }
  0x99   : > { %1194 = vsyncadd (%p1679_p8), %s363_s18, 4294967040  ;;  %s371_s0 = sand.u32 1, %s1315_s13   ;;  %s847_s11 = sshll.u32 %s1509_s20, 3 }
  0x9a   : > { %s372_s17 = scalar_lea.sflag [#allocation6], %s371_s0  ;;  %s1523_s25 = scalar_lea.vmem [#allocation5], %s847_s11 }
  0x9b   : > { %1196 = dma.done.wait (%p1679_p8), %s372_s17, 128  }
  0x9c   : > { %1198 = vsyncadd (%p1679_p8), %s372_s17, 4294967168  ;;  %p1680_p11 = scmp.eq.s32.totalorder %s1315_s13, 0 }
  0x9e   : > { %1200 = dma.done.wait (%p1680_p11), [#allocation6], 512   ;;  %p1681_p0 = pmov %p1680_p11 }
  0xa0   : > { %1202 = vsyncadd (%p1681_p0), [#allocation6], 4294966784  ;;  %p1682_p9 = pmov %p1681_p0 }
  0xa1   : > { %p1683_p12 = pmov %p1681_p0 }
  0xa2   : > { %1204 = dma.done.wait (%p1682_p9), [#allocation9], 512  }
  0xa3   : > { %1206 = vsyncadd (%p1683_p12), [#allocation9], 4294966784  ;;  %vm441_vm0 = vcmask 261120   ;;  %v430_v0 = vld [vmem:[#allocation7] sm:$0xff]  ;;  %v431_v1 = vld [vmem:[#allocation7 + $0x8] sm:$0xff]  ;;  %v1237_v11 = vmov 0.0|0.0  }
  0xa4   : > { %v432_v2 = vld [vmem:[#allocation7 + $0x10] sm:$0xff]  ;;  %v901_v3 = vpack.c.bf16 %v431_v1, %v430_v0  ;;  %v433_v4 = vld [vmem:[#allocation7 + $0x18] sm:$0xff]  ;;  %v571_v8 = vld [vmem:[#allocation8] sm:$0xff]  ;;  %909 = vmatprep.subr.bf16.mxu1 %v1237_v11  ;;  %vm1238_vm1 = vmmov 0   ;;  %v1239_v14 = vmov 0.0   ;;  %s427_s24 = scalar_lea.vmem [#allocation11], %s847_s11 }
  0xa5   : > { %v428_v5 = vld [vmem:[%s366_s6] sm:$0xff]  ;;  %v905_v6 = vpack.c.bf16 %v433_v4, %v432_v2  ;;  %v429_v7 = vld [vmem:[%s366_s6 + $0x8] sm:$0xff]  ;;  %898 = vmatprep.mubr.msk.f32.mxu1 %vm1238_vm1, %v1239_v14  ;;  %s863_s28 = sshll.u32 %s1315_s13, 7  ;;  %s691_s14 = sshll.u32 %s427_s24, 4  ;;  %s692_s14 = int_to_ptr.vmem [resolvable:$true] %s691_s14 }
  0xa6   : > { %887 = vmatprep.mubr.msk.f32.mxu0 %vm441_vm0, %v428_v5  ;;  %902 = vmatprep.subr.bf16.mxu0 %v901_v3  ;;  %v572_v9 = vld [vmem:[#allocation8 + $0x8] sm:$0xff]  ;;  %v573_v10 = vld [vmem:[#allocation8 + $0x10] sm:$0xff]  ;;  %v574_v13 = vld [vmem:[#allocation8 + $0x18] sm:$0xff]  ;;  %s1558_s19 = scalar_lea.hbm %s1647_s9, %s863_s28  ;;  %s662_s23 = scalar_lea.sflag [#allocation12], %s1509_s20 }
  0xa7   : > { %904 = vmatpush3.bf16.msra.mxu0 %v901_v3  ;;  %v910_v12 = vpack.c.bf16 %v572_v9, %v571_v8  ;;  %v913_v15 = vpack.c.bf16 %v574_v13, %v573_v10  ;;  %v570_v16 = vld [vmem:[%s1523_s25] sm:$0xff]  ;;  %s1119_s18 = scalar_lea.vmem %s692_s14, 128  ;;  %p1684_p13 = scmp.ne.s32.totalorder %s1671_s26, 0 }
  0xa8   : > { %906 = vmatprep.subr.bf16.mxu0 %v905_v6  ;;  %v852_v17 = vld [vmem:[%s1641_s3] ss:$0 sm:$0xff]  ;;  %p1120_p1 = scmp.ne.s32.totalorder %s692_s14, %s1119_s18  ;;  %s1240_s6 = smov [#allocation11]  }
  0xa9   : > { %911 = vmatpush3.bf16.msra.mxu1 %v910_v12  ;;  %v857_v35 = vld [vmem:[%s1645_s7] ss:$0 sm:$0xff]  ;;  %s1123_s0 = sshll.u32 %s1240_s6, 4  ;;  %s1124_s0 = int_to_ptr.vmem [resolvable:$false] %s1123_s0 }
  0xaa   : > { %912 = vmatprep.subr.bf16.mxu1 %v1237_v11  ;;  %p1121_p6 = pnand %p1120_p1, %p1684_p13  ;;  %s1125_s11 = scalar_lea.vmem %s1124_s0, 256 }
  0xab   : > { %908 = vmatpush3.bf16.msra.mxu0 %v905_v6  ;;  %p1126_p4 = scmp.lt.s32.totalorder %s692_s14, %s1124_s0  ;;  %p1127_p5 = scmp.lt.s32.totalorder %s1125_s11, %s1119_s18 }
  0xac   : > { %p1122_p10 = pneg %p1121_p6 }
  0xad   : > { %914 = vmatpush3.bf16.msra.mxu1 %v913_v15  ;;  %p1128_p3 = por %p1127_p5, %p1126_p4 }
  0xae   : > { %888 = vmatmul.mubr.msk.f32.vlgmr.msra.gmra.mrb[0].mxu0 %vm441_vm0, %v429_v7 }
  0xaf   : > { %p1129_p7 = pnand %p1128_p3, %p1122_p10 }
  0xb0   : > { %899 = vmatmul.mubr.msk.f32.vlgmr.msra.gmra.mrb[0].mxu1 %vm441_vm0, %v570_v16 }
 0x181   : > { %v889_v18 = vpop.f32.mrb[0].mxu0 }
 0x182   : > { %v514_v19 = vpop.f32.mrb[1].mxu0  ;;  %v520_v21 = vadd.f32 %v889_v18, %v852_v17 }
 0x183   : > { %v515_v20 = vadd.f32 %v852_v17, %v514_v19  ;;  %v651_v34 = vpop.f32.mrb[0].mxu1 }
 0x184   : > { %v528_v23 = vsel %vm441_vm0, %v520_v21, 0.0  ;;  %v900_v36 = vpop.f32.mrb[1].mxu1  ;;  %v652_v37 = vadd.f32 %v857_v35, %v651_v34 }
 0x185   : > { %v525_v22 = vsel %vm441_vm0, %v515_v20, 0.0 }
 0x186   : > { %526 = vadd.xlane.f32.xlu0 %v525_v22  ;;  %655 = vst.msk [vmem:[%s427_s24] sm:$0xff] %vm441_vm0, %v652_v37 }
 0x18a   : > { %529 = vadd.xlane.f32.xlu0 %v528_v23 }
 0x213   : > { %v527_v24 = vpop.xlane.xlu0 %526 }
 0x214   : > { %v532_v25 = vmul.f32 0.03125, %v527_v24 }
 0x216   : > { %v534_v26 = vsub.f32 %v515_v20, %v532_v25 }
 0x217   : > { %v530_v27 = vpop.xlane.xlu0 %529 }
 0x218   : > { %v533_v28 = vmul.f32 0.03125, %v530_v27  ;;  %v536_v29 = vmul.f32 %v534_v26, %v534_v26 }
 0x21a   : > { %v535_v30 = vsub.f32 %v520_v21, %v533_v28  ;;  %v538_v31 = vsel %vm441_vm0, %v536_v29, 0.0 }
 0x21b   : > { %539 = vadd.xlane.f32.xlu1 %v538_v31 }
 0x21c   : > { %v537_v32 = vmul.f32 %v535_v30, %v535_v30 }
 0x21e   : > { %v541_v33 = vsel %vm441_vm0, %v537_v32, 0.0 }
 0x21f   : > { %542 = vadd.xlane.f32.xlu1 %v541_v33 }
 0x220   : > { %1132 = shalt.err (!%p1129_p7)
}
 0x221   : > { %s1133_s17 = scalar_lea.hbm %s1558_s19, 128  ;;  %s1137_s29 = scalar_lea.hbm %s1647_s9, 256 }
 0x222   : > { %p1134_p2 = scmp.ne.s32.totalorder %s1558_s19, %s1133_s17  ;;  %p1138_p0 = scmp.lt.u32.totalorder %s1558_s19, %s1647_s9 }
 0x223   : > { %p1139_p9 = scmp.lt.u32.totalorder %s1137_s29, %s1133_s17  ;;  %p1141_p1 = scmp.lt.u32.totalorder %s1133_s17, %s1558_s19 }
 0x224   : > { %p1135_p8 = pnand %p1134_p2, %p1684_p13 }
 0x225   : > { %p1140_p12 = por %p1139_p9, %p1138_p0 }
 0x226   : > { %p1136_p11 = pneg %p1135_p8 }
 0x227   : > { %p1142_p6 = por %p1141_p1, %p1140_p12 }
 0x229   : > { %p1143_p10 = pnand %p1142_p6, %p1136_p11 }
 0x22b   : > { %1146 = shalt.err (!%p1143_p10)
}
 0x22c   : > { %928 = dma.vmem_to_hbm [thread:$0]  (%p1684_p13), %s692_s14, 128, %s1558_s19, %s662_s23   ;;  %v855_v45 = vld [vmem:[%s1642_s4] ss:$0 sm:$0xff] }
 0x22d   : > { %v856_v47 = vld [vmem:[%s1643_s5] ss:$0 sm:$0xff]  ;;  %s867_s14 = sshll.u32 %s1315_s13, 8  ;;  %s420_s19 = scalar_lea.vmem [#allocation10], %s846_s22 }
 0x22e   : > { %s675_s23 = sshll.u32 %s420_s19, 4  ;;  %s1591_s0 = scalar_lea.hbm %s1646_s8, %s867_s14  ;;  %s1593_s23 = int_to_ptr.vmem [resolvable:$true] %s675_s23 }
 0x22f   : > { %s657_s13 = scalar_lea.sflag [#allocation4], %s1509_s20  ;;  %s1147_s11 = scalar_lea.vmem %s1593_s23, 256 }
 0x230   : > { %p1148_p4 = scmp.ne.s32.totalorder %s1593_s23, %s1147_s11  ;;  %s1241_s22 = smov [#allocation10]  }
 0x231   : > { %s1151_s17 = sshll.u32 %s1241_s22, 4  ;;  %s1152_s17 = int_to_ptr.vmem [resolvable:$false] %s1151_s17 }
 0x232   : > { %p1149_p5 = pnand %p1148_p4, %p1684_p13  ;;  %s1153_s25 = scalar_lea.vmem %s1152_s17, 512 }
 0x233   : > { %p1154_p7 = scmp.lt.s32.totalorder %s1593_s23, %s1152_s17  ;;  %p1155_p2 = scmp.lt.s32.totalorder %s1153_s25, %s1147_s11 }
 0x234   : > { %p1150_p3 = pneg %p1149_p5 }
 0x235   : > { %p1156_p8 = por %p1155_p2, %p1154_p7 }
 0x237   : > { %p1157_p11 = pnand %p1156_p8, %p1150_p3 }
 0x2a8   : > { %v540_v38 = vpop.xlane.xlu1 %539 }
 0x2a9   : > { %v544_v39 = vmul.f32 0.03125, %v540_v38 }
 0x2ab   : > { %v546_v40 = vadd.f32 1e-05, %v544_v39 }
 0x2ac   : > { %v543_v41 = vpop.xlane.xlu1 %542 }
 0x2ad   : > { %999 = vrsqrt.f32 %v546_v40  ;;  %v545_v42 = vmul.f32 0.03125, %v543_v41 }
 0x2af   : > { %v547_v43 = vadd.f32 1e-05, %v545_v42 }
 0x2b1   : > { %1001 = vrsqrt.f32 %v547_v43 }
 0x2b7   : > { %v1000_v44 = vpop.eup %999 }
 0x2b8   : > { %v550_v46 = vmul.f32 %v1000_v44, %v534_v26 }
 0x2ba   : > { %v558_v48 = vmul.f32 %v855_v45, %v550_v46 }
 0x2bb   : > { %v1002_v49 = vpop.eup %1001 }
 0x2bc   : > { %v566_v50 = vadd.f32 %v856_v47, %v558_v48  ;;  %v551_v51 = vmul.f32 %v1002_v49, %v535_v30 }
 0x2be   : > { %v559_v52 = vmul.f32 %v855_v45, %v551_v51  ;;  %568 = vst.msk [vmem:[%s420_s19] sm:$0xff] %vm441_vm0, %v566_v50 }
 0x2c0   : > { %v567_v53 = vadd.f32 %v856_v47, %v559_v52 }
 0x2c2   : > { %569 = vst.msk [vmem:[%s420_s19 + $0x8] sm:$0xff] %vm441_vm0, %v567_v53 }
 0x2c3   : > { %1160 = shalt.err (!%p1157_p11)
}
 0x2c4   : > { %s1161_s15 = scalar_lea.hbm %s1591_s0, 256  ;;  %s1165_s16 = scalar_lea.hbm %s1646_s8, 512 }
 0x2c5   : > { %p1162_p0 = scmp.ne.s32.totalorder %s1591_s0, %s1161_s15  ;;  %p1166_p1 = scmp.lt.u32.totalorder %s1591_s0, %s1646_s8 }
 0x2c6   : > { %p1167_p6 = scmp.lt.u32.totalorder %s1165_s16, %s1161_s15  ;;  %p1169_p4 = scmp.lt.u32.totalorder %s1161_s15, %s1591_s0 }
 0x2c7   : > { %p1163_p9 = pnand %p1162_p0, %p1684_p13 }
 0x2c8   : > { %p1168_p10 = por %p1167_p6, %p1166_p1 }
 0x2c9   : > { %p1164_p12 = pneg %p1163_p9 }
 0x2ca   : > { %p1170_p5 = por %p1169_p4, %p1168_p10 }
 0x2cc   : > { %p1171_p3 = pnand %p1170_p5, %p1164_p12 }
 0x2ce   : > { %1174 = shalt.err (!%p1171_p3)
}
 0x2cf   : > { %s1242_s21 = smov 128   ;;  %s1243_s27 = smov 8  }
 0x2d0   : > { %927 = dma.vmem_to_hbm [thread:$0]  (%p1684_p13), %s1593_s23, 256, %s1591_s0, %s657_s13, %s1242_s21, %s1242_s21, %s1243_s27  }
 0x2d1 PF: > { %s1685_s14 = sld [smem:[#allocation20_spill]]  ;;  %s703_s19 = sand.u32 1, %s1217_s30  }
 0x2d2   : > { %p1687_p2 = scmp.ge.s32.totalorder %s1229_s12, 2  ;;  %s704_s18 = scalar_lea.sflag [#allocation4], %s703_s19 }
 0x2d7   : > { %p1686_p7 = scmp.ne.s32.totalorder %s1685_s14, 0 }
 0x2d9   : > { %p946_p8 = pnand %p1687_p2, %p1686_p7 }
 0x2db   : > { %1208 = dma.done.wait (!%p946_p8), %s704_s18, 256  }
 0x2dc   : > { %1210 = vsyncadd (!%p946_p8), %s704_s18, 4294967040  ;;  %s713_s6 = scalar_lea.sflag [#allocation12], %s703_s19 }
 0x2dd   : > { %1212 = dma.done.wait (!%p946_p8), %s713_s6, 128  }
 0x2de   : > { %1214 = vsyncadd (!%p946_p8), %s713_s6, 4294967168  ;;  %s1688_s12 = sld [smem:[#allocation21_spill]]  ;;  %s1689_s11 = sld [smem:[#allocation19_spill]] }
 0x2df   : > { %s1690_s26 = sld [smem:[#allocation22_spill]]  ;;  %s1691_s30 = smov %s1221_s10 }
 0x2e4   : > { %p30_p13 = scmp.ge.s32.totalorder %s1688_s12, 4   ;;  %s1692_s10 = smov %s1689_s11 }
 0x2e5   : > { %s1693_s11 = smov %s1690_s26 }
 0x2e6   :  { %32 = sbr.rel (!%p30_p13) target bundleno = 14 (0xe), region = 135 }
 0x2ed   :  { %718 = vsyncpa [#allocation3], 1 }
 0x2ee   :  { %720 = vsyncpa [#allocation3 + $0x1], 1 }
 0x2ef   :  { %721 = vsyncpa [#allocation6], 1 }
 0x2f0   :  { %723 = vsyncpa [#allocation6 + $0x1], 1 }
 0x2f1   :  { %724 = vsyncpa [#allocation9], 1 }
 0x2f2   :  { %725 = vsyncpa [#allocation4], 1 }
 0x2f3   :  { %727 = vsyncpa [#allocation4 + $0x1], 1 }
 0x2f4   :  { %728 = vsyncpa [#allocation12], 1 }
 0x2f5   :  { %730 = vsyncpa [#allocation12 + $0x1], 1 }

</bundles_post_ra>
